<compile_context>
chip_gen: v7x
topology: tpu7x:2x2x1
jax: 0.10.0
libtpu: 0.0.40
codegen_flags: <defaults>
</compile_context>

<pallas_src>
import jax
import jax.numpy as jnp
from jax import lax
from jax.experimental import pallas as pl
from jax.experimental.pallas import tpu as pltpu

EPS = 1e-5  # nn.BatchNorm2d default eps


def _round_up(a, b):
    return (a + b - 1) // b * b


# --------------------------------------------------------------------------
# Pass 1: conv (im2col matmul on the MXU) + per-tile BN partial statistics.
# --------------------------------------------------------------------------
def conv_stats_kernel(p_ref, w_ref, y_ref, sum_ref, ssq_ref):
    # bf16 x bf16 -> f32 accumulation on the MXU.
    y = jnp.dot(p_ref[...], w_ref[...], preferred_element_type=jnp.float32)
    y_ref[...] = y                                          # (tm, CP) lane-dense

    # Fused partial stats (sum / sum-of-squares) for this M-tile; no second
    # traversal of y and no cross-tile dependence (grid axis stays parallel).
    s = jnp.sum(y, axis=0, keepdims=True)                   # (1, CP)
    q = jnp.sum(y * y, axis=0, keepdims=True)               # (1, CP)
    sum_ref[...] = jnp.broadcast_to(s, sum_ref.shape)       # (8, CP) sublane bcast
    ssq_ref[...] = jnp.broadcast_to(q, ssq_ref.shape)


# --------------------------------------------------------------------------
# Pass 2: fused per-channel scale/shift (gamma*inv_std, beta - mean*scale)
# + ReLU. Exactly one mul and one add per element before the max.
# --------------------------------------------------------------------------
def bn_relu_kernel(y_ref, scale_ref, shift_ref, o_ref):
    o_ref[...] = jnp.maximum(y_ref[...] * scale_ref[...] + shift_ref[...], 0.0)


def block_forward(x_nchw, w_oihw, gamma, beta, *, tm=512):
    """Equivalent of Block.forward(x) (training-mode BN) for NCHW input x."""
    N, Cin, H, W = x_nchw.shape
    Cout = w_oihw.shape[0]
    Ho = (H + 2 * 1 - 3) // 2 + 1
    Wo = (W + 2 * 1 - 3) // 2 + 1

    M = N * Ho * Wo
    K = 9 * Cin
    CP = _round_up(max(Cout, 128), 128)          # lane-dense padded channel dim

    # Tile M; pad M with zero rows (they contribute 0 to the stats and are
    # sliced off at the end).
    tm = min(tm, _round_up(M, 8))
    tm = _round_up(tm, 8)
    M_pad = _round_up(M, tm)
    num_tiles = M_pad // tm

    # ---- glue: NCHW -> NHWC, pad, im2col (plain JAX), cast to bf16 ----
    x = jnp.transpose(x_nchw, (0, 2, 3, 1)).astype(jnp.float32)
    xp = jnp.pad(x, ((0, 0), (1, 1), (1, 1), (0, 0)))
    pats = []
    for kh in range(3):
        for kw in range(3):
            pats.append(xp[:, kh:kh + 2 * (Ho - 1) + 1:2,
                           kw:kw + 2 * (Wo - 1) + 1:2, :])   # (N, Ho, Wo, Cin)
    patches = jnp.stack(pats, axis=3).reshape(M, K)          # (M, K), kh,kw,cin order
    patches = patches.astype(jnp.bfloat16)
    if M_pad > M:
        patches = jnp.pad(patches, ((0, M_pad - M), (0, 0)))

    # weight (Cout, Cin, kh, kw) -> (kh, kw, Cin, Cout) -> (K, Cout) -> pad to CP
    wmat = jnp.transpose(w_oihw, (2, 3, 1, 0)).reshape(K, Cout).astype(jnp.float32)
    wmat = jnp.pad(wmat, ((0, 0), (0, CP - Cout))).astype(jnp.bfloat16)

    cparams = pltpu.CompilerParams(
        dimension_semantics=("parallel",),
        vmem_limit_bytes=32 * 1024 * 1024,
    )

    # ---- pass 1: conv tiles + per-tile partial stats ----
    y_conv, psum, pssq = pl.pallas_call(
        conv_stats_kernel,
        out_shape=(
            jax.ShapeDtypeStruct((M_pad, CP), jnp.float32),
            jax.ShapeDtypeStruct((num_tiles * 8, CP), jnp.float32),
            jax.ShapeDtypeStruct((num_tiles * 8, CP), jnp.float32),
        ),
        grid=(num_tiles,),
        in_specs=[
            pl.BlockSpec((tm, K), lambda i: (i, 0)),
            pl.BlockSpec((K, CP), lambda i: (0, 0)),
        ],
        out_specs=(
            pl.BlockSpec((tm, CP), lambda i: (i, 0)),
            pl.BlockSpec((8, CP), lambda i: (i, 0)),
            pl.BlockSpec((8, CP), lambda i: (i, 0)),
        ),
        compiler_params=cparams,
    )(patches, wmat)

    # ---- tiny global-stat reduction + fold into per-channel scale/shift ----
    psum = psum.reshape(num_tiles, 8, CP)[:, 0, :]           # (num_tiles, CP)
    pssq = pssq.reshape(num_tiles, 8, CP)[:, 0, :]
    total_sum = jnp.sum(psum, axis=0)                        # (CP,)
    total_ssq = jnp.sum(pssq, axis=0)
    m = jnp.float32(M)                                       # true element count
    mean = total_sum / m
    var = jnp.maximum(total_ssq / m - mean * mean, 0.0)      # biased variance
    inv_std = lax.rsqrt(var + EPS)

    gamma_pad = jnp.pad(gamma.astype(jnp.float32), (0, CP - Cout))
    beta_pad = jnp.pad(beta.astype(jnp.float32), (0, CP - Cout))
    scale = (gamma_pad * inv_std).reshape(1, CP)
    shift = (beta_pad - mean * gamma_pad * inv_std).reshape(1, CP)

    # ---- pass 2: normalize + ReLU (lane-dense stores) ----
    out_pad = pl.pallas_call(
        bn_relu_kernel,
        out_shape=jax.ShapeDtypeStruct((M_pad, CP), jnp.float32),
        grid=(num_tiles,),
        in_specs=[
            pl.BlockSpec((tm, CP), lambda i: (i, 0)),
            pl.BlockSpec((1, CP), lambda i: (0, 0)),
            pl.BlockSpec((1, CP), lambda i: (0, 0)),
        ],
        out_specs=pl.BlockSpec((tm, CP), lambda i: (i, 0)),
        compiler_params=cparams,
    )(y_conv, scale, shift)

    # ---- glue: (M, Cout) -> NHWC -> NCHW ----
    y = out_pad[:M, :Cout].reshape(N, Ho, Wo, Cout)
    return jnp.transpose(y, (0, 3, 1, 2))


if __name__ == "__main__":
    key = jax.random.PRNGKey(0)
    k_x, k_w, k_g, k_b = jax.random.split(key, 4)

    N, Cin, H, W = 2, 4, 16, 16
    Cout = 8

    x = jax.random.normal(k_x, (N, Cin, H, W), dtype=jnp.float32)

    # Kaiming-uniform-like bound for the conv weight; non-trivial gamma/beta.
    fan_in = Cin * 3 * 3
    bound = 1.0 / jnp.sqrt(jnp.float32(fan_in))
    w = jax.random.uniform(k_w, (Cout, Cin, 3, 3), jnp.float32, -bound, bound)
    gamma = jax.random.uniform(k_g, (Cout,), jnp.float32, 0.5, 1.5)
    beta = 0.1 * jax.random.normal(k_b, (Cout,), dtype=jnp.float32)

    # Small tm so the toy shape exercises the multi-tile / cross-tile-stats path.
    out = block_forward(x, w, gamma, beta, tm=64)
    out = jax.block_until_ready(out)

    # Pure-JAX reference (same semantics as the PyTorch module in train mode).
    # Inputs are quantized to bf16 exactly like the kernel's matmul operands,
    # so the only difference is f32 accumulation order.
    xq = x.astype(jnp.bfloat16).astype(jnp.float32)
    wq = w.astype(jnp.bfloat16).astype(jnp.float32)
    conv = lax.conv_general_dilated(
        xq, wq, window_strides=(2, 2), padding=((1, 1), (1, 1)),
        dimension_numbers=("NCHW", "OIHW", "NCHW"))
    mu = conv.mean(axis=(0, 2, 3), keepdims=True)
    var = conv.var(axis=(0, 2, 3), keepdims=True)   # biased, as PyTorch BN uses
    ref = (conv - mu) * lax.rsqrt(var + EPS)
    ref = ref * gamma.reshape(1, Cout, 1, 1) + beta.reshape(1, Cout, 1, 1)
    ref = jnp.maximum(ref, 0.0)

    assert out.shape == (N, Cout, H // 2, W // 2)
    assert jnp.allclose(out, ref, atol=5e-4, rtol=5e-4)
    print("KERNEL_OK")
</pallas_src>

<mosaic_0001>
module attributes {stable_mosaic.version = 11 : i64} {
  func.func @conv_stats_kernel(%arg0: i32, %arg1: memref<64x36xbf16, #tpu.memory_space<vmem>>, %arg2: memref<36x128xbf16, #tpu.memory_space<vmem>>, %arg3: memref<64x128xf32, #tpu.memory_space<vmem>>, %arg4: memref<8x128xf32, #tpu.memory_space<vmem>>, %arg5: memref<8x128xf32, #tpu.memory_space<vmem>>) attributes {dimension_semantics = [#tpu.dimension_semantics<parallel>], iteration_bounds = array<i64: 2>, scalar_prefetch = 0 : i64, scratch_operands = 0 : i64, tpu.core_type = #tpu.core_type<tc>, window_params = [{transform_indices = @transform_0, window_bounds = array<i64: 64, 36>}, {pipeline_mode = #tpu.pipeline_mode<synchronous>, transform_indices = @transform_1, window_bounds = array<i64: 36, 128>}, {transform_indices = @transform_2, window_bounds = array<i64: 64, 128>}, {transform_indices = @transform_3, window_bounds = array<i64: 8, 128>}, {transform_indices = @transform_4, window_bounds = array<i64: 8, 128>}]} {
    %c0 = arith.constant 0 : index
    %c0_0 = arith.constant 0 : index
    %0 = vector.load %arg1[%c0, %c0_0] : memref<64x36xbf16, #tpu.memory_space<vmem>>, vector<64x36xbf16>
    %c0_1 = arith.constant 0 : index
    %c0_2 = arith.constant 0 : index
    %1 = vector.load %arg2[%c0_1, %c0_2] : memref<36x128xbf16, #tpu.memory_space<vmem>>, vector<36x128xbf16>
    %cst = arith.constant dense<0.000000e+00> : vector<64x128xf32>
    %2 = tpu.matmul %0, %1, %cst {dimension_numbers = #tpu.dot_dimension_numbers<[1], [0], [0], [1], [0, 0, 1, 1], [], []>} : vector<64x36xbf16>, vector<36x128xbf16>, vector<64x128xf32> -> vector<64x128xf32>
    %c0_3 = arith.constant 0 : index
    %c0_4 = arith.constant 0 : index
    %3 = vector.load %arg3[%c0_3, %c0_4] : memref<64x128xf32, #tpu.memory_space<vmem>>, vector<64x128xf32>
    tpu.vector_store %arg3[%c0_3, %c0_4], %2 {strides = array<i32>} : memref<64x128xf32, #tpu.memory_space<vmem>>, vector<64x128xf32>,
    %cst_5 = arith.constant dense<0.000000e+00> : vector<128xf32>
    %4 = vector.multi_reduction <add>, %2, %cst_5 [0] : vector<64x128xf32> to vector<128xf32>
    %5 = vector.shape_cast %4 : vector<128xf32> to vector<1x128xf32>
    %6 = arith.mulf %2, %2 : vector<64x128xf32>
    %cst_6 = arith.constant dense<0.000000e+00> : vector<128xf32>
    %7 = vector.multi_reduction <add>, %6, %cst_6 [0] : vector<64x128xf32> to vector<128xf32>
    %8 = vector.shape_cast %7 : vector<128xf32> to vector<1x128xf32>
    %9 = vector.shape_cast %5 : vector<1x128xf32> to vector<1x128xf32>
    %10 = vector.broadcast %9 : vector<1x128xf32> to vector<8x128xf32>
    %c0_7 = arith.constant 0 : index
    %c0_8 = arith.constant 0 : index
    %11 = vector.load %arg4[%c0_7, %c0_8] : memref<8x128xf32, #tpu.memory_space<vmem>>, vector<8x128xf32>
    tpu.vector_store %arg4[%c0_7, %c0_8], %10 {strides = array<i32>} : memref<8x128xf32, #tpu.memory_space<vmem>>, vector<8x128xf32>,
    %12 = vector.shape_cast %8 : vector<1x128xf32> to vector<1x128xf32>
    %13 = vector.broadcast %12 : vector<1x128xf32> to vector<8x128xf32>
    %c0_9 = arith.constant 0 : index
    %c0_10 = arith.constant 0 : index
    %14 = vector.load %arg5[%c0_9, %c0_10] : memref<8x128xf32, #tpu.memory_space<vmem>>, vector<8x128xf32>
    tpu.vector_store %arg5[%c0_9, %c0_10], %13 {strides = array<i32>} : memref<8x128xf32, #tpu.memory_space<vmem>>, vector<8x128xf32>,
    return
  }
  func.func @transform_0(%arg0: i32) -> (i32, i32) {
    %c0_i32 = arith.constant 0 : i32
    %c0_i32_0 = arith.constant 0 : i32
    return %arg0, %c0_i32 : i32, i32
  }
  func.func @transform_1(%arg0: i32) -> (i32, i32) {
    %c0_i32 = arith.constant 0 : i32
    %c0_i32_0 = arith.constant 0 : i32
    %c0_i32_1 = arith.constant 0 : i32
    return %c0_i32, %c0_i32_0 : i32, i32
  }
  func.func @transform_2(%arg0: i32) -> (i32, i32) {
    %c0_i32 = arith.constant 0 : i32
    %c0_i32_0 = arith.constant 0 : i32
    return %arg0, %c0_i32 : i32, i32
  }
  func.func @transform_3(%arg0: i32) -> (i32, i32) {
    %c0_i32 = arith.constant 0 : i32
    %c0_i32_0 = arith.constant 0 : i32
    return %arg0, %c0_i32 : i32, i32
  }
  func.func @transform_4(%arg0: i32) -> (i32, i32) {
    %c0_i32 = arith.constant 0 : i32
    %c0_i32_0 = arith.constant 0 : i32
    return %arg0, %c0_i32 : i32, i32
  }
}

</mosaic_0001>

<bundles_post_ra>
// kernel: tpu_custom_call.1
= control target key start
LH: loop header
LB: loop body
LE: loop exit
PB: predicated region body
PF: predicated region fallthrough
CT: control target
= control target key end

     0   :  { %10 = vsyncpa [#allocation3], 0  ;;  %s1021_s0 = inlined_call_operand.vmem [shape: bf16[128,36], index: 0, kind: input, shape index: {}]   ;;  %s1022_s1 = inlined_call_operand.vmem [shape: bf16[36,128], index: 1, kind: input, shape index: {}]   ;;  %s1023_s2 = inlined_call_operand.hbm [shape: f32[128,128], index: 2, kind: output, shape index: {0}]   ;;  %s1024_s3 = inlined_call_operand.hbm [shape: f32[16,128], index: 3, kind: output, shape index: {1}]   ;;  %s1025_s4 = inlined_call_operand.hbm [shape: f32[16,128], index: 4, kind: output, shape index: {2}]  }
   0x1   :  { %12 = vsyncpa [#allocation3 + $0x1], 0 }
   0x2   :  { %13 = vsyncpa [#allocation5], 0 }
   0x3   :  { %15 = vsyncpa [#allocation5 + $0x1], 0  ;;  %s836_s15 = smov 0   ;;  %s838_s16 = smov 0  }
   0x4   :  { %s840_s17 = smov 0   ;;  %s842_s18 = smov 0  }
   0x5 LB: > { %s857_s19 = sadd.s32 4294967295, %s804_s18   ;;  %s565_s20 = sadd.s32 4294967294, %s804_s18   ;;  %s804_s18 = sphi %s842_s18, %s1031_s18   ;;  %s800_s17 = sphi %s840_s17, %s1030_s17   ;;  %s796_s16 = sphi %s838_s16, %s1029_s16   ;;  %s792_s15 = sphi %s836_s15, %s1028_s15  }
   0x6   : > { %s861_s21 = sadd.s32 1, %s804_s18   ;;  %s75_s22 = sadd.s32 1, %s800_s17 }
   0x7   : > { %s72_s23 = ssub.s32 %s804_s18, %s861_s21  ;;  %p85_p0 = scmp.ne.s32.totalorder %s800_s17, %s796_s16 }
   0x8   : > { %p73_p1 = scmp.eq.s32.totalorder %s72_s23, 0  ;;  %p86_p2 = scmp.eq.s32.totalorder %s857_s19, 1 }
   0x9   : > { %p91_p3 = scmp.ne.s32.totalorder %s796_s16, %s792_s15  ;;  %p92_p4 = scmp.eq.s32.totalorder %s565_s20, 1 }
   0xa   : > { %s874_s24 = scalar_select %p73_p1, %s800_s17, %s75_s22  }
   0xb   : > { %p876_p5 = por %p86_p2, %p85_p0  ;;  %p880_p6 = por %p92_p4, %p91_p3 }
   0xc   : > { %p568_p7 = scmp.ge.s32.totalorder %s804_s18, 1  ;;  %p174_p8 = scmp.lt.s32.totalorder %s804_s18, 3 }
   0xe   : > { %p175_p9 = pnand %p568_p7, %p174_p8 }
   0xf   : > { %v675_v0 = vld [vmem:[%s1022_s1] sm:$0xff] (!%p175_p9)   ;;  %v676_v1 = vld [vmem:[%s1022_s1 + $0x8] sm:$0xff] (!%p175_p9)   ;;  %s572_s5 = sshll.u32 (!%p175_p9), %s857_s19, 3  ;;  %v677_v2 = vld [vmem:[%s1022_s1 + $0x10] ss:$0 sps:$4 sm:$0x33] (!%p175_p9)  }
  0x10   : > { %178 = sbr.rel (%p175_p9) target bundleno = 316 (0x13c), region = 28  ;;  %602 = vmatprep.subr.bf16.mxu0 (!%p175_p9), %v675_v0  ;;  %616 = vmatprep.subr.bf16.mxu1 (!%p175_p9), %v675_v0  ;;  %p211_p10 = scmp.lt.s32.totalorder (!%p175_p9), %s572_s5, 15  ;;  %vm279_vm0 = vcmask (!%p175_p9), 1041408   ;;  %vm266_vm1 = vcmask (!%p175_p9), 293888  }
  0x11   : > { %603 = vmatpush3.bf16.msra.mxu0 (!%p175_p9), %v675_v0  ;;  %619 = vmatpush3.bf16.msra.mxu1 (!%p175_p9), %v675_v0  ;;  %v281_v3 = vsel (!%p175_p9), %vm279_vm0, %v677_v2, 0  ;;  %s900_s12 = sand.u32 (!%p175_p9), 1, %s796_s16   ;;  %s594_s14 = sshll.u32 (!%p175_p9), %s857_s19, 10 }
  0x12   : > { %604 = vmatprep.subr.bf16.mxu0 (!%p175_p9), %v676_v1  ;;  %617 = vmatprep.subr.bf16.mxu1 (!%p175_p9), %v676_v1  ;;  %s569_s13 = sshll.u32 (!%p175_p9), %s900_s12, 6  ;;  %s907_s29 = scalar_lea.hbm (!%p175_p9), %s1023_s2, %s594_s14 }
  0x13   : > { %s195_s22 = scalar_lea.vmem (!%p175_p9), [#allocation2], %s569_s13  ;;  %s393_s30 = scalar_lea.sflag (!%p175_p9), [#allocation3], %s900_s12 }
  0x14   : > { %s416_s23 = sshll.u32 (!%p175_p9), %s195_s22, 4  ;;  %s806_s6 = smov (!%p175_p9), [#allocation2]   ;;  %s909_s23 = int_to_ptr.vmem [resolvable:$true] %s416_s23 }
  0x15   : > { %605 = vmatpush3.bf16.msra.mxu0 (!%p175_p9), %v676_v1  ;;  %620 = vmatpush3.bf16.msra.mxu1 (!%p175_p9), %v676_v1  ;;  %s686_s7 = sshll.u32 (!%p175_p9), %s806_s6, 4  ;;  %s687_s7 = int_to_ptr.vmem [resolvable:$false] %s686_s7 }
  0x16   : > { %622 = vmatprep.subr.msk.bf16.mxu0 (!%p175_p9), %vm279_vm0, %v677_v2  ;;  %623 = vmatprep.subr.msk.bf16.mxu1 (!%p175_p9), %vm279_vm0, %v677_v2  ;;  %p689_p0 = scmp.lt.s32.totalorder (!%p175_p9), %s909_s23, %s687_s7 }
  0x17   : > { %s1033_s5 = smov (!%p211_p10, %s572_s5), 15 }
  0x18   : > { %s573_s8 = sshll.u32 %s1033_s5, 2  ;;  %s682_s5 = scalar_lea.vmem %s909_s23, 1024 }
  0x19   : > { %s214_s11 = scalar_lea.vmem %s1021_s0, %s573_s8  ;;  %607 = vmatpush3.bf16.msra.mxu0 %v281_v3  ;;  %621 = vmatpush3.bf16.msra.mxu1 %v281_v3  ;;  %p683_p11 = scmp.ne.s32.totalorder %s909_s23, %s682_s5 }
  0x1a   : > { %v678_v4 = vld [vmem:[%s214_s11] sm:$0xff]   ;;  %v679_v5 = vld [vmem:[%s214_s11 + $0x8] sm:$0xff]   ;;  %v680_v6 = vld [vmem:[%s214_s11 + $0x10] sm:$0xff]   ;;  %s688_s8 = scalar_lea.vmem %s687_s7, 2048 }
  0x1b   : > { %608 = vmatprep.mubr.msk.bf16.mxu0 %vm266_vm1, %v678_v4  ;;  %v681_v7 = vld [vmem:[%s214_s11 + $0x18] sm:$0xff]   ;;  %612 = vmatprep.mubr.msk.bf16.mxu1 %vm266_vm1, %v680_v6  ;;  %p684_p12 = pnand %p683_p11, %p876_p5  ;;  %p690_p1 = scmp.lt.s32.totalorder %s688_s8, %s682_s5 }
  0x1c   : > { %609 = vmatmul.mubr.msk.bf16.vlgmr.msra.gmra.mrb[0].mxu0 %vm266_vm1, %v679_v5  ;;  %613 = vmatmul.mubr.msk.bf16.vlgmr.msra.gmra.mrb[0].mxu1 %vm266_vm1, %v681_v7 }
  0x1d   : > { %p685_p13 = pneg %p684_p12  ;;  %p691_p2 = por %p690_p1, %p689_p0 }
  0x1f   : > { %p692_p3 = pnand %p691_p2, %p685_p13 }
  0xef   : > { %v610_v8 = vpop.f32.mrb[0].mxu0  ;;  %v614_v9 = vpop.f32.mrb[0].mxu1 }
  0xf0   : > { %350 = vst [vmem:[%s195_s22 + $0x10] sm:$0xff] %v610_v8  ;;  %v317_v10 = vpop.f32.mrb[1].mxu0  ;;  %354 = vst [vmem:[%s195_s22 + $0x30] sm:$0xff] %v614_v9  ;;  %v333_v11 = vpop.f32.mrb[1].mxu1 }
  0xf1   : > { %348 = vst [vmem:[%s195_s22] sm:$0xff] %v317_v10  ;;  %v611_v12 = vpop.f32.mrb[2].mxu0  ;;  %352 = vst [vmem:[%s195_s22 + $0x20] sm:$0xff] %v333_v11  ;;  %v615_v13 = vpop.f32.mrb[2].mxu1  ;;  %v369_v16 = vmul.f32 %v317_v10, %v317_v10 }
  0xf2   : > { %351 = vst [vmem:[%s195_s22 + $0x18] sm:$0xff] %v611_v12  ;;  %v320_v14 = vpop.f32.mrb[3].mxu0  ;;  %355 = vst [vmem:[%s195_s22 + $0x38] sm:$0xff] %v615_v13  ;;  %v336_v15 = vpop.f32.mrb[3].mxu1 }
  0xf3   : > { %349 = vst [vmem:[%s195_s22 + $0x8] sm:$0xff] %v320_v14  ;;  %v356_v17 = vadd.f32 %v320_v14, %v317_v10  ;;  %v370_v18 = vmul.f32 %v320_v14, %v320_v14  ;;  %353 = vst [vmem:[%s195_s22 + $0x28] sm:$0xff] %v336_v15 }
  0xf4   : > { %695 = shalt.err (!%p692_p3)
}
  0xf5   : > { %s696_s9 = scalar_lea.hbm %s907_s29, 1024  ;;  %s700_s13 = scalar_lea.hbm %s1023_s2, 2048 }
  0xf6   : > { %p697_p4 = scmp.ne.s32.totalorder %s907_s29, %s696_s9  ;;  %p701_p9 = scmp.lt.u32.totalorder %s907_s29, %s1023_s2 }
  0xf7   : > { %p702_p10 = scmp.lt.u32.totalorder %s700_s13, %s696_s9  ;;  %p704_p12 = scmp.lt.u32.totalorder %s696_s9, %s907_s29 }
  0xf8   : > { %p698_p7 = pnand %p697_p4, %p876_p5 }
  0xf9   : > { %p703_p11 = por %p702_p10, %p701_p9 }
  0xfa   : > { %p699_p8 = pneg %p698_p7 }
  0xfb   : > { %p705_p13 = por %p704_p12, %p703_p11 }
  0xfd   : > { %p706_p0 = pnand %p705_p13, %p699_p8 }
  0xff   : > { %709 = shalt.err (!%p706_p0)
}
 0x100   : > { %s807_s27 = smov 128   ;;  %s808_s28 = smov 8   ;;  %v371_v19 = vmul.f32 %v610_v8, %v610_v8  ;;  %v357_v20 = vadd.f32 %v610_v8, %v356_v17  ;;  %v377_v21 = vadd.f32 %v370_v18, %v369_v16  ;;  %v372_v22 = vmul.f32 %v611_v12, %v611_v12 }
 0x101   : > { %624 = dma.vmem_to_hbm [thread:$0]  (%p876_p5), %s909_s23, 1024, %s907_s29, %s393_s30, %s807_s27, %s807_s27, %s808_s28   ;;  %v373_v25 = vmul.f32 %v333_v11, %v333_v11  ;;  %v374_v30 = vmul.f32 %v336_v15, %v336_v15  ;;  %v375_v31 = vmul.f32 %v614_v9, %v614_v9  ;;  %v376_v34 = vmul.f32 %v615_v13, %v615_v13 }
 0x102   : > { %v378_v23 = vadd.f32 %v377_v21, %v371_v19  ;;  %v358_v24 = vadd.f32 %v611_v12, %v357_v20  ;;  %s570_s23 = sshll.u32 %s900_s12, 3  ;;  %s397_s29 = sand.u32 1, %s857_s19  }
 0x103   : > { %s590_s30 = sshll.u32 %s857_s19, 7  ;;  %s202_s5 = scalar_lea.vmem [#allocation4], %s570_s23 }
 0x104   : > { %v359_v26 = vadd.f32 %v358_v24, %v333_v11  ;;  %v379_v27 = vadd.f32 %v378_v23, %v372_v22  ;;  %s432_s6 = sshll.u32 %s202_s5, 4  ;;  %s938_s7 = scalar_lea.vmem [#allocation6], %s570_s23  ;;  %s946_s6 = int_to_ptr.vmem [resolvable:$true] %s432_s6 }
 0x105   : > { %s445_s8 = sshll.u32 %s938_s7, 4  ;;  %s944_s10 = scalar_lea.hbm %s1024_s3, %s590_s30  ;;  %s953_s8 = int_to_ptr.vmem [resolvable:$true] %s445_s8 }
 0x106   : > { %v380_v28 = vadd.f32 %v379_v27, %v373_v25  ;;  %v360_v29 = vadd.f32 %v359_v26, %v336_v15  ;;  %s951_s13 = scalar_lea.hbm %s1025_s4, %s590_s30  ;;  %s955_s14 = scalar_lea.sflag [#allocation5], %s397_s29 }
 0x107   : > { %s710_s22 = scalar_lea.vmem %s946_s6, 128  ;;  %s809_s27 = smov [#allocation4]  }
 0x108   : > { %v361_v32 = vadd.f32 %v614_v9, %v360_v29  ;;  %v381_v33 = vadd.f32 %v380_v28, %v374_v30  ;;  %p711_p1 = scmp.ne.s32.totalorder %s946_s6, %s710_s22  ;;  %s714_s28 = sshll.u32 %s809_s27, 4  ;;  %s715_s28 = int_to_ptr.vmem [resolvable:$false] %s714_s28 }
 0x109   : > { %s716_s23 = scalar_lea.vmem %s715_s28, 256  ;;  %p717_p4 = scmp.lt.s32.totalorder %s946_s6, %s715_s28 }
 0x10a   : > { %v362_v35 = vadd.f32 %v615_v13, %v361_v32  ;;  %v382_v36 = vadd.f32 %v381_v33, %v375_v31  ;;  %p712_p2 = pnand %p711_p1, %p876_p5  ;;  %p718_p7 = scmp.lt.s32.totalorder %s716_s23, %s710_s22 }
 0x10c   : > { %v363_v37 = vrot.slane %v362_v35, 4  ;;  %v383_v38 = vadd.f32 %v382_v36, %v376_v34  ;;  %p713_p3 = pneg %p712_p2  ;;  %p719_p8 = por %p718_p7, %p717_p4 }
 0x10e   : > { %v364_v39 = vadd.f32 %v363_v37, %v362_v35  ;;  %v384_v40 = vrot.slane %v383_v38, 4  ;;  %p720_p9 = pnand %p719_p8, %p713_p3 }
 0x110   : > { %v385_v41 = vadd.f32 %v384_v40, %v383_v38  ;;  %v365_v42 = vrot.slane %v364_v39, 2 }
 0x112   : > { %v366_v43 = vadd.f32 %v365_v42, %v364_v39  ;;  %v386_v44 = vrot.slane %v385_v41, 2 }
 0x114   : > { %v367_v45 = vrot.slane %v366_v43, 1  ;;  %v387_v46 = vadd.f32 %v386_v44, %v385_v41 }
 0x116   : > { %v368_v47 = vadd.f32 %v367_v45, %v366_v43  ;;  %v388_v48 = vrot.slane %v387_v46, 1 }
 0x118   : > { %390 = vst [vmem:[%s202_s5] sm:$0xff] %v368_v47  ;;  %v389_v49 = vadd.f32 %v388_v48, %v387_v46 }
 0x119   : > { %723 = shalt.err (!%p720_p9)
}
 0x11a   : > { %s724_s29 = scalar_lea.hbm %s944_s10, 128  ;;  %s728_s9 = scalar_lea.hbm %s1024_s3, 256 }
 0x11b   : > { %p725_p10 = scmp.ne.s32.totalorder %s944_s10, %s724_s29  ;;  %p729_p13 = scmp.lt.u32.totalorder %s944_s10, %s1024_s3 }
 0x11c   : > { %p730_p0 = scmp.lt.u32.totalorder %s728_s9, %s724_s29  ;;  %p732_p2 = scmp.lt.u32.totalorder %s724_s29, %s944_s10 }
 0x11d   : > { %p726_p11 = pnand %p725_p10, %p876_p5 }
 0x11e   : > { %p731_p1 = por %p730_p0, %p729_p13 }
 0x11f   : > { %p727_p12 = pneg %p726_p11 }
 0x120   : > { %p733_p3 = por %p732_p2, %p731_p1 }
 0x122   : > { %p734_p4 = pnand %p733_p3, %p727_p12 }
 0x124   : > { %737 = shalt.err (!%p734_p4)
}
 0x125   : > { %625 = dma.vmem_to_hbm [thread:$0]  (%p876_p5), %s946_s6, 128, %s944_s10, %s955_s14   ;;  %391 = vst [vmem:[%s938_s7] sm:$0xff] %v389_v49 }
 0x126   : > { %s738_s11 = scalar_lea.vmem %s953_s8, 128  ;;  %s810_s22 = smov [#allocation6]  }
 0x127   : > { %p739_p7 = scmp.ne.s32.totalorder %s953_s8, %s738_s11  ;;  %s742_s27 = sshll.u32 %s810_s22, 4  ;;  %s743_s27 = int_to_ptr.vmem [resolvable:$false] %s742_s27 }
 0x128   : > { %s744_s28 = scalar_lea.vmem %s743_s27, 256  ;;  %p745_p10 = scmp.lt.s32.totalorder %s953_s8, %s743_s27 }
 0x129   : > { %p740_p8 = pnand %p739_p7, %p876_p5  ;;  %p746_p11 = scmp.lt.s32.totalorder %s744_s28, %s738_s11 }
 0x12b   : > { %p741_p9 = pneg %p740_p8  ;;  %p747_p12 = por %p746_p11, %p745_p10 }
 0x12d   : > { %p748_p13 = pnand %p747_p12, %p741_p9 }
 0x12f   : > { %751 = shalt.err (!%p748_p13)
}
 0x130   : > { %s752_s6 = scalar_lea.hbm %s951_s13, 128  ;;  %s756_s23 = scalar_lea.hbm %s1025_s4, 256 }
 0x131   : > { %p753_p0 = scmp.ne.s32.totalorder %s951_s13, %s752_s6  ;;  %p757_p3 = scmp.lt.u32.totalorder %s951_s13, %s1025_s4 }
 0x132   : > { %p758_p4 = scmp.lt.u32.totalorder %s756_s23, %s752_s6  ;;  %p760_p8 = scmp.lt.u32.totalorder %s752_s6, %s951_s13 }
 0x133   : > { %p754_p1 = pnand %p753_p0, %p876_p5 }
 0x134   : > { %p759_p7 = por %p758_p4, %p757_p3 }
 0x135   : > { %p755_p2 = pneg %p754_p1 }
 0x136   : > { %p761_p9 = por %p760_p8, %p759_p7 }
 0x138   : > { %p762_p10 = pnand %p761_p9, %p755_p2 }
 0x13a   : > { %765 = shalt.err (!%p762_p10)
}
 0x13b   : > { %626 = dma.vmem_to_hbm [thread:$0]  (%p876_p5), %s953_s8, 128, %s951_s13, %s955_s14  }
 0x13c PF: > { %p640_p11 = scmp.ge.s32.totalorder %s804_s18, 2  ;;  %s457_s5 = sand.u32 1, %s792_s15  }
 0x13d   : > { %s458_s9 = scalar_lea.sflag [#allocation3], %s457_s5 }
 0x13e   : > { %p631_p12 = pnand %p640_p11, %p880_p6 }
 0x140   : > { %783 = dma.done.wait (!%p631_p12), %s458_s9, 1024  }
 0x141   : > { %785 = vsyncadd (!%p631_p12), %s458_s9, 4294966272  ;;  %s466_s12 = sand.u32 1, %s565_s20  }
 0x142   : > { %s467_s19 = scalar_lea.sflag [#allocation5], %s466_s12 }
 0x143   : > { %787 = dma.done.wait (!%p631_p12), %s467_s19, 256  }
 0x144   : > { %789 = vsyncadd (!%p631_p12), %s467_s19, 4294967040  ;;  %p18_p5 = scmp.ge.s32.totalorder %s861_s21, 4   ;;  %s1028_s15 = smov %s796_s16 }
 0x145   : > { %s1029_s16 = smov %s800_s17  ;;  %s1030_s17 = smov %s874_s24 }
 0x146   : > { %s1031_s18 = smov %s861_s21  ;;  %20 = sbr.rel (!%p18_p5) target bundleno = 5 (0x5), region = 95 }
 0x14d   :  { %481 = vsyncpa [#allocation3], 1 }
 0x14e   :  { %483 = vsyncpa [#allocation3 + $0x1], 1 }
 0x14f   :  { %484 = vsyncpa [#allocation5], 1 }
 0x150   :  { %486 = vsyncpa [#allocation5 + $0x1], 1 }

</bundles_post_ra>
